<compile_context>
chip_gen: v6e
topology: v6e:2x2x1
jax: 0.10.0
libtpu: 0.0.40
codegen_flags: <defaults>
</compile_context>

<pallas_src>
import functools

import jax
import jax.numpy as jnp
import numpy as np
from jax import lax
from jax.experimental import pallas as pl
from jax.experimental.pallas import tpu as pltpu

BN_EPS = 1e-5
# Safe on v5e/v6e/v7x (v7x has 64 MiB/TC); tiles below fit comfortably.
VMEM_LIMIT_BYTES = 32 * 1024 * 1024


def _silu(x):
    # exp and the approximate reciprocal both land on the EUP, keeping the
    # f32 epilogue (bias add / mask / residual) off the VALU slots.
    return x * pl.reciprocal(1.0 + jnp.exp(-x), approx=True)


def _largest_divisor_leq(n, cap, min_quotient=1):
    cap = max(1, min(cap, n))
    for d in range(cap, 0, -1):
        if n % d == 0 and n // d >= min_quotient:
            return d
    return None


# ----------------------------------------------------------------------------
# Pointwise (1x1) conv + BN + SiLU over a LIST of channel-chunk inputs,
# producing a LIST of channel-chunk outputs.
#   - cv1: 1 input chunk  -> 2 output chunks (torch.chunk(2, dim=C) is free)
#   - cv2: many chunks    -> 1 output        (no HBM concat: K-accumulation)
# BN scale is pre-folded into the (per-chunk, aligned) weight tiles.
# ----------------------------------------------------------------------------
def _pw_kernel(n_chunks, out_splits, *refs):
    x_refs = refs[:n_chunks]
    w_refs = refs[n_chunks:2 * n_chunks]
    b_ref = refs[2 * n_chunks]
    o_refs = refs[2 * n_chunks + 1:]

    tile_m = x_refs[0].shape[0]
    cout_tot = b_ref.shape[-1]

    acc = jnp.zeros((tile_m, cout_tot), jnp.float32)
    for xr, wr in zip(x_refs, w_refs):
        acc = acc + jnp.dot(xr[...], wr[...],
                            preferred_element_type=jnp.float32)
    y = _silu(acc + b_ref[...])                     # f32 epilogue
    # TODO(synk): at real YOLO widths pad each output chunk to a multiple of
    # 128 lanes so these stores are unmasked (vst, not vst.msk).
    off = 0
    for orf, co in zip(o_refs, out_splits):
        orf[...] = y[:, off:off + co].astype(orf.dtype)
        off += co


def conv1x1_bn_silu(x_list, w_hwio, scale, bias, out_splits, *,
                    tile_m_cap=1024, out_dtype=jnp.bfloat16):
    # x_list: list of (N,H,W,Cin_i); w_hwio: (1,1,sum(Cin_i),Cout)
    N, H, Wd, _ = x_list[0].shape
    cin_list = [int(x.shape[-1]) for x in x_list]
    cin_tot = sum(cin_list)
    cout_tot = int(w_hwio.shape[-1])
    out_splits = tuple(int(c) for c in out_splits)
    assert sum(out_splits) == cout_tot

    # Fold BN scale into the weights; split per chunk so the kernel never
    # slices a misaligned K sub-tile.  bf16 matmul operands, f32 bias.
    wmat = (w_hwio.reshape(cin_tot, cout_tot) * scale[None, :]
            ).astype(jnp.bfloat16)
    w_chunks = []
    off = 0
    for ci in cin_list:
        w_chunks.append(wmat[off:off + ci, :])
        off += ci
    brow = bias.reshape(1, cout_tot).astype(jnp.float32)

    M = N * H * Wd
    tile_m = _largest_divisor_leq(M, tile_m_cap, min_quotient=2)
    if tile_m is None or (tile_m < 64 and M > 64):
        # Awkward M: fall back to padding the ragged tail tile (rare).
        tile_m = min(tile_m_cap, M)
        m_pad = ((M + tile_m - 1) // tile_m) * tile_m
    else:
        m_pad = M                                   # no jnp.pad HBM round-trip

    xms = []
    for x in x_list:
        xm = x.reshape(M, x.shape[-1]).astype(jnp.bfloat16)
        if m_pad != M:
            xm = jnp.pad(xm, ((0, m_pad - M), (0, 0)))
        xms.append(xm)

    n_chunks = len(xms)
    kernel = functools.partial(_pw_kernel, n_chunks, out_splits)
    in_specs = ([pl.BlockSpec((tile_m, ci), lambda i: (i, 0))
                 for ci in cin_list]
                + [pl.BlockSpec((ci, cout_tot), lambda i: (0, 0))
                   for ci in cin_list]
                + [pl.BlockSpec((1, cout_tot), lambda i: (0, 0))])
    out_specs = [pl.BlockSpec((tile_m, co), lambda i: (i, 0))
                 for co in out_splits]
    out_shape = [jax.ShapeDtypeStruct((m_pad, co), out_dtype)
                 for co in out_splits]

    outs = pl.pallas_call(
        kernel,
        out_shape=out_shape,
        grid_spec=pltpu.PrefetchScalarGridSpec(
            num_scalar_prefetch=0,
            grid=(m_pad // tile_m,),
            in_specs=in_specs,
            out_specs=out_specs),
        compiler_params=pltpu.CompilerParams(
            dimension_semantics=("parallel",),
            vmem_limit_bytes=VMEM_LIMIT_BYTES),
    )(*xms, *w_chunks, brow)

    result = []
    for o, co in zip(outs, out_splits):
        if m_pad != M:
            o = o[:M]
        result.append(o.reshape(N, H, Wd, co))
    return result


# ----------------------------------------------------------------------------
# Fused Bottleneck: conv3x3+BN+SiLU -> conv3x3+BN+SiLU (-> +x) in one kernel.
# Grid (N, H//tile_h); the (tile_h + 4)-row input window is DMA'd from the
# UNPADDED HBM array into a 2-slot VMEM scratch, double-buffered across grid
# steps (prefetch tile i+1 while computing tile i).  Both 3x3 tap dimensions
# are folded into the matmul K dim (one K=9C dot per conv) and the
# intermediate activation never leaves VMEM.
# ----------------------------------------------------------------------------
def _bneck_kernel(x_hbm, wf1_ref, b1_ref, wf2_ref, b2_ref, o_ref, xs, sems, *,
                  H, W, C, th, n_h, shortcut):
    n = pl.program_id(0)
    i = pl.program_id(1)
    cur = i % 2
    nxt = 1 - cur

    # Scratch row r of the current slot holds image row i*th - 2 + r.
    def copy(slot, src_row, dst_row, nrows, sem):
        return pltpu.make_async_copy(
            x_hbm.at[n, pl.ds(src_row, nrows), :, :],
            xs.at[slot, pl.ds(dst_row, nrows), :, :],
            sem)

    if n_h > 1:
        # -- prefetch tile i+1 into the other slot (overlaps this compute) ----
        @pl.when(i < n_h - 1)
        def _prefetch():
            j = i + 1
            # main window: image rows [j*th-2, j*th+th) -> scratch [0, th+2)
            copy(nxt, j * th - 2, 0, th + 2, sems.at[nxt, 0]).start()

            @pl.when(j < n_h - 1)
            def _prefetch_tail():
                # bottom halo: image rows [(j+1)*th, +2) -> scratch [th+2, th+4)
                copy(nxt, (j + 1) * th, th + 2, 2, sems.at[nxt, 1]).start()

        # -- tile 0 of each image was never prefetched: exposed fetch ---------
        @pl.when(i == 0)
        def _prime():
            cp = copy(0, 0, 2, th + 2, sems.at[0, 0])
            cp.start()
            cp.wait()

        # -- tiles > 0: wait on the DMAs issued one grid step earlier ---------
        @pl.when(i > 0)
        def _wait():
            copy(cur, 0, 0, th + 2, sems.at[cur, 0]).wait()

            @pl.when(i < n_h - 1)
            def _wait_tail():
                copy(cur, 0, th + 2, 2, sems.at[cur, 1]).wait()
    else:
        cp = copy(0, 0, 2, H, sems.at[0, 0])
        cp.start()
        cp.wait()

    # -- load the row window; zero out-of-image / stale halo rows (row mask) --
    x_loc = xs[cur]                                        # (th+4, W, C) bf16
    row = (lax.broadcasted_iota(jnp.int32, (th + 4, 1, 1), 0)
           + (i * th - 2))
    x_loc = jnp.where(jnp.logical_and(row >= 0, row < H), x_loc, 0)

    zcol = jnp.zeros((th + 4, 1, C), x_loc.dtype)
    xp = jnp.concatenate([zcol, x_loc, zcol], axis=1)      # (th+4, W+2, C)

    def fold9(t, out_rows):
        # Fold all 9 taps into the matmul K dim -> one MXU push per conv.
        parts = [t[kh:kh + out_rows, kw:kw + W, :]
                 for kh in range(3) for kw in range(3)]
        return jnp.concatenate(parts, axis=-1).reshape(out_rows * W, 9 * C)

    # -- conv1 + BN + SiLU: intermediate rows [i*th-1, i*th+th+1) -------------
    a1 = jnp.dot(fold9(xp, th + 2), wf1_ref[...],
                 preferred_element_type=jnp.float32)
    t1 = _silu(a1 + b1_ref[...]).reshape(th + 2, W, C)
    irow = (lax.broadcasted_iota(jnp.int32, (th + 2, 1, 1), 0)
            + (i * th - 1))
    t1 = jnp.where(jnp.logical_and(irow >= 0, irow < H), t1, 0.0)
    t1 = t1.astype(jnp.bfloat16)                           # stays in VMEM
    zcol2 = jnp.zeros((th + 2, 1, C), jnp.bfloat16)
    t1p = jnp.concatenate([zcol2, t1, zcol2], axis=1)      # (th+2, W+2, C)

    # -- conv2 + BN + SiLU (+ residual): output rows [i*th, i*th+th) ----------
    a2 = jnp.dot(fold9(t1p, th), wf2_ref[...],
                 preferred_element_type=jnp.float32)
    y = _silu(a2 + b2_ref[...])
    if shortcut:
        y = y + x_loc[2:2 + th, :, :].astype(jnp.float32).reshape(th * W, C)
    o_ref[0] = y.reshape(th, W, C).astype(o_ref.dtype)


def _pick_tile_h(H, cap):
    # Largest divisor of H (>=2) not exceeding cap that keeps >= 2 row tiles.
    for d in range(min(cap, H), 1, -1):
        if H % d == 0 and H // d >= 2:
            return d, H // d
    return H, 1


def bottleneck_3x3_fused(x_nhwc, cv1_p, cv2_p, *, shortcut, tile_h_cap=32,
                         out_dtype=jnp.bfloat16):
    N, H, Wd, C = x_nhwc.shape
    th, n_h = _pick_tile_h(H, tile_h_cap)
    assert th * n_h == H

    def fold(w_hwio, scale):
        ci, co = int(w_hwio.shape[2]), int(w_hwio.shape[3])
        # (3,3,Cin,Cout) -> (9*Cin, Cout), flattened as (kh, kw, cin).
        return (w_hwio * scale[None, None, None, :]
                ).reshape(9 * ci, co).astype(jnp.bfloat16)

    wf1 = fold(cv1_p[0], cv1_p[1])
    b1 = cv1_p[2].reshape(1, C).astype(jnp.float32)
    wf2 = fold(cv2_p[0], cv2_p[1])
    b2 = cv2_p[2].reshape(1, C).astype(jnp.float32)
    xb = x_nhwc.astype(jnp.bfloat16)

    kernel = functools.partial(_bneck_kernel, H=H, W=Wd, C=C,
                               th=th, n_h=n_h, shortcut=shortcut)
    out = pl.pallas_call(
        kernel,
        out_shape=jax.ShapeDtypeStruct((N, H, Wd, C), out_dtype),
        grid_spec=pltpu.PrefetchScalarGridSpec(
            num_scalar_prefetch=0,
            grid=(N, n_h),
            in_specs=[
                pl.BlockSpec(memory_space=pl.ANY),               # x in HBM
                pl.BlockSpec((9 * C, C), lambda n, i: (0, 0)),
                pl.BlockSpec((1, C), lambda n, i: (0, 0)),
                pl.BlockSpec((9 * C, C), lambda n, i: (0, 0)),
                pl.BlockSpec((1, C), lambda n, i: (0, 0)),
            ],
            out_specs=pl.BlockSpec((1, th, Wd, C),
                                   lambda n, i: (n, i, 0, 0)),
            scratch_shapes=[
                pltpu.VMEM((2, th + 4, Wd, C), jnp.bfloat16),    # 2-slot halo buf
                pltpu.SemaphoreType.DMA((2, 2)),                 # [slot, main/tail]
            ]),
        compiler_params=pltpu.CompilerParams(
            # i-axis must stay sequential per core (cross-step DMA prefetch).
            dimension_semantics=("parallel", "arbitrary"),
            vmem_limit_bytes=VMEM_LIMIT_BYTES),
    )(xb, wf1, b1, wf2, b2)
    return out


# ----------------------------------------------------------------------------
# Parameter construction (deterministic, synthetic) + C2f forward
# ----------------------------------------------------------------------------
def make_conv_params(key, ch_in, ch_out, k):
    kw, kg, kb, km, kv = jax.random.split(key, 5)
    # PyTorch Conv2d weight layout is (Cout, Cin, kH, kW); store as HWIO.
    w = jax.random.normal(kw, (ch_out, ch_in, k, k), jnp.float32)
    w = w * (1.0 / np.sqrt(ch_in * k * k))
    gamma = 1.0 + 0.1 * jax.random.normal(kg, (ch_out,), jnp.float32)
    beta = 0.1 * jax.random.normal(kb, (ch_out,), jnp.float32)
    mean = 0.1 * jax.random.normal(km, (ch_out,), jnp.float32)
    var = jax.random.uniform(kv, (ch_out,), jnp.float32, minval=0.5, maxval=1.5)
    scale = gamma / jnp.sqrt(var + BN_EPS)
    bias = beta - mean * scale
    w_hwio = jnp.transpose(w, (2, 3, 1, 0))       # (kH, kW, Cin, Cout)
    return (w_hwio, scale, bias)


def init_c2f_params(key, ch_in, ch_out, bnecks, expansion=0.5):
    ch_hidden = int(ch_out * expansion)
    keys = jax.random.split(key, 2 + 2 * bnecks)
    params = {
        "cv1": make_conv_params(keys[0], ch_in, 2 * ch_hidden, 1),
        "cv2": make_conv_params(keys[1], (2 + bnecks) * ch_hidden, ch_out, 1),
        "m": [],
    }
    for i in range(bnecks):
        params["m"].append({
            "cv1": make_conv_params(keys[2 + 2 * i], ch_hidden, ch_hidden, 3),
            "cv2": make_conv_params(keys[3 + 2 * i], ch_hidden, ch_hidden, 3),
        })
    return params, ch_hidden


def c2f_forward(x_nchw, params, ch_hidden, *, shortcut=False):
    x = jnp.transpose(x_nchw, (0, 2, 3, 1))                 # NCHW -> NHWC
    # cv1: the channel split (torch.chunk) happens at the kernel boundary.
    y0, y1 = conv1x1_bn_silu([x], *params["cv1"],
                             out_splits=(ch_hidden, ch_hidden))
    ys = [y0, y1]
    for bp in params["m"]:
        ys.append(bottleneck_3x3_fused(ys[-1], bp["cv1"], bp["cv2"],
                                       shortcut=shortcut))
    # cv2: consume all chunks directly (K-accumulation) — no HBM concat.
    cout = int(params["cv2"][0].shape[-1])
    (out,) = conv1x1_bn_silu(ys, *params["cv2"], out_splits=(cout,))
    out = out.astype(x_nchw.dtype)
    return jnp.transpose(out, (0, 3, 1, 2))                  # NHWC -> NCHW


# ----------------------------------------------------------------------------
# Pure-JAX f32 reference (for correctness check)
# ----------------------------------------------------------------------------
def _ref_conv_bn_silu(x, w_hwio, scale, bias):
    k = w_hwio.shape[0]
    p = k // 2
    y = lax.conv_general_dilated(
        x, w_hwio, window_strides=(1, 1), padding=[(p, p), (p, p)],
        dimension_numbers=("NHWC", "HWIO", "NHWC"))
    y = y * scale + bias
    return y * jax.nn.sigmoid(y)


def c2f_reference(x_nchw, params, ch_hidden, *, shortcut=False):
    x = jnp.transpose(x_nchw, (0, 2, 3, 1))
    y = _ref_conv_bn_silu(x, *params["cv1"])
    ys = [y[..., :ch_hidden], y[..., ch_hidden:]]
    for bp in params["m"]:
        t = _ref_conv_bn_silu(ys[-1], *bp["cv1"])
        t = _ref_conv_bn_silu(t, *bp["cv2"])
        if shortcut:
            t = ys[-1] + t
        ys.append(t)
    out = _ref_conv_bn_silu(jnp.concatenate(ys, axis=-1), *params["cv2"])
    return jnp.transpose(out, (0, 3, 1, 2))


if __name__ == "__main__":
    key = jax.random.PRNGKey(0)
    k_x, k_p = jax.random.split(key)

    # C2f(ch_in=4, ch_out=8, bnecks=2, shortcut=True) on a (2, 4, 16, 16) input
    N, CH_IN, H, W = 2, 4, 16, 16
    CH_OUT, BNECKS, SHORTCUT = 8, 2, True

    x = jax.random.normal(k_x, (N, CH_IN, H, W), jnp.float32)
    params, ch_hidden = init_c2f_params(k_p, CH_IN, CH_OUT, BNECKS)

    out = jax.block_until_ready(
        c2f_forward(x, params, ch_hidden, shortcut=SHORTCUT))
    ref = jax.block_until_ready(
        c2f_reference(x, params, ch_hidden, shortcut=SHORTCUT))

    assert out.shape == (N, CH_OUT, H, W), out.shape
    np.testing.assert_allclose(np.asarray(out), np.asarray(ref),
                               rtol=5e-2, atol=5e-2)
    print("KERNEL_OK")
</pallas_src>

<mosaic_0001>
module attributes {stable_mosaic.version = 11 : i64} {
  func.func @_pw_kernel(%arg0: i32, %arg1: memref<256x4xbf16, #tpu.memory_space<vmem>>, %arg2: memref<4x8xbf16, #tpu.memory_space<vmem>>, %arg3: memref<1x8xf32, #tpu.memory_space<vmem>>, %arg4: memref<256x4xbf16, #tpu.memory_space<vmem>>, %arg5: memref<256x4xbf16, #tpu.memory_space<vmem>>) attributes {dimension_semantics = [#tpu.dimension_semantics<parallel>], iteration_bounds = array<i64: 2>, scalar_prefetch = 0 : i64, scratch_operands = 0 : i64, tpu.core_type = #tpu.core_type<tc>, window_params = [{transform_indices = @transform_0, window_bounds = array<i64: 256, 4>}, {pipeline_mode = #tpu.pipeline_mode<synchronous>, transform_indices = @transform_1, window_bounds = array<i64: 4, 8>}, {pipeline_mode = #tpu.pipeline_mode<synchronous>, transform_indices = @transform_2, window_bounds = array<i64: 1, 8>}, {transform_indices = @transform_3, window_bounds = array<i64: 256, 4>}, {transform_indices = @transform_4, window_bounds = array<i64: 256, 4>}]} {
    %cst = arith.constant 0.000000e+00 : f32
    %0 = vector.broadcast %cst : f32 to vector<256x8xf32>
    %c0 = arith.constant 0 : index
    %c0_0 = arith.constant 0 : index
    %1 = vector.load %arg1[%c0, %c0_0] : memref<256x4xbf16, #tpu.memory_space<vmem>>, vector<256x4xbf16>
    %c0_1 = arith.constant 0 : index
    %c0_2 = arith.constant 0 : index
    %2 = vector.load %arg2[%c0_1, %c0_2] : memref<4x8xbf16, #tpu.memory_space<vmem>>, vector<4x8xbf16>
    %cst_3 = arith.constant dense<0.000000e+00> : vector<256x8xf32>
    %3 = tpu.matmul %1, %2, %cst_3 {dimension_numbers = #tpu.dot_dimension_numbers<[1], [0], [0], [1], [0, 0, 1, 1], [], []>} : vector<256x4xbf16>, vector<4x8xbf16>, vector<256x8xf32> -> vector<256x8xf32>
    %4 = arith.addf %0, %3 : vector<256x8xf32>
    %c0_4 = arith.constant 0 : index
    %c0_5 = arith.constant 0 : index
    %5 = vector.load %arg3[%c0_4, %c0_5] : memref<1x8xf32, #tpu.memory_space<vmem>>, vector<1x8xf32>
    %6 = vector.broadcast %5 : vector<1x8xf32> to vector<256x8xf32>
    %7 = arith.addf %4, %6 : vector<256x8xf32>
    %cst_6 = arith.constant 0.000000e+00 : f32
    %8 = vector.broadcast %cst_6 : f32 to vector<256x8xf32>
    %9 = arith.subf %8, %7 : vector<256x8xf32>
    %10 = math.exp %9 : vector<256x8xf32>
    %cst_7 = arith.constant 1.000000e+00 : f32
    %11 = vector.broadcast %cst_7 : f32 to vector<256x8xf32>
    %12 = arith.addf %11, %10 : vector<256x8xf32>
    %13 = tpu.reciprocal %12 {approx = true} : vector<256x8xf32> -> vector<256x8xf32>
    %14 = arith.mulf %7, %13 : vector<256x8xf32>
    %15 = vector.extract_strided_slice %14 {offsets = [0, 0], sizes = [256, 4], strides = [1, 1]} : vector<256x8xf32> to vector<256x4xf32>
    %16 = arith.truncf %15 : vector<256x4xf32> to vector<256x4xbf16>
    %c0_8 = arith.constant 0 : index
    %c0_9 = arith.constant 0 : index
    %17 = vector.load %arg4[%c0_8, %c0_9] : memref<256x4xbf16, #tpu.memory_space<vmem>>, vector<256x4xbf16>
    tpu.vector_store %arg4[%c0_8, %c0_9], %16 {strides = array<i32>} : memref<256x4xbf16, #tpu.memory_space<vmem>>, vector<256x4xbf16>,
    %18 = vector.extract_strided_slice %14 {offsets = [0, 4], sizes = [256, 4], strides = [1, 1]} : vector<256x8xf32> to vector<256x4xf32>
    %19 = arith.truncf %18 : vector<256x4xf32> to vector<256x4xbf16>
    %c0_10 = arith.constant 0 : index
    %c0_11 = arith.constant 0 : index
    %20 = vector.load %arg5[%c0_10, %c0_11] : memref<256x4xbf16, #tpu.memory_space<vmem>>, vector<256x4xbf16>
    tpu.vector_store %arg5[%c0_10, %c0_11], %19 {strides = array<i32>} : memref<256x4xbf16, #tpu.memory_space<vmem>>, vector<256x4xbf16>,
    return
  }
  func.func @transform_0(%arg0: i32) -> (i32, i32) {
    %c0_i32 = arith.constant 0 : i32
    %c0_i32_0 = arith.constant 0 : i32
    return %arg0, %c0_i32 : i32, i32
  }
  func.func @transform_1(%arg0: i32) -> (i32, i32) {
    %c0_i32 = arith.constant 0 : i32
    %c0_i32_0 = arith.constant 0 : i32
    %c0_i32_1 = arith.constant 0 : i32
    return %c0_i32, %c0_i32_0 : i32, i32
  }
  func.func @transform_2(%arg0: i32) -> (i32, i32) {
    %c0_i32 = arith.constant 0 : i32
    %c0_i32_0 = arith.constant 0 : i32
    %c0_i32_1 = arith.constant 0 : i32
    return %c0_i32, %c0_i32_0 : i32, i32
  }
  func.func @transform_3(%arg0: i32) -> (i32, i32) {
    %c0_i32 = arith.constant 0 : i32
    %c0_i32_0 = arith.constant 0 : i32
    return %arg0, %c0_i32 : i32, i32
  }
  func.func @transform_4(%arg0: i32) -> (i32, i32) {
    %c0_i32 = arith.constant 0 : i32
    %c0_i32_0 = arith.constant 0 : i32
    return %arg0, %c0_i32 : i32, i32
  }
}

</mosaic_0001>

<bundles_post_ra>
// kernel: tpu_custom_call.1
= control target key start
LH: loop header
LB: loop body
LE: loop exit
PB: predicated region body
PF: predicated region fallthrough
CT: control target
= control target key end

     0   :  { %s1473_s15 = smov 0   ;;  %s1928_s0 = inlined_call_operand.vmem [shape: bf16[512,4], index: 0, kind: input, shape index: {}]   ;;  %s1929_s1 = inlined_call_operand.vmem [shape: bf16[4,8], index: 1, kind: input, shape index: {}]   ;;  %s1930_s2 = inlined_call_operand.vmem [shape: f32[1,8], index: 2, kind: input, shape index: {}]   ;;  %s1931_s3 = inlined_call_operand.vmem [shape: bf16[512,4], index: 3, kind: output, shape index: {0}]   ;;  %s1932_s4 = inlined_call_operand.vmem [shape: bf16[512,4], index: 4, kind: output, shape index: {1}]  }
   0x1 LB: > { %s1121_s16 = sadd.s32 4294967295, %s1445_s15   ;;  %p1125_p0 = scmp.ge.s32.totalorder %s1445_s15, 1  ;;  %s1445_s15 = sphi %s1473_s15, %s15_s15  }
   0x2   : > { %p166_p1 = scmp.lt.s32.totalorder %s1445_s15, 3 }
   0x4   : > { %p167_p2 = pnand %p1125_p0, %p166_p1 }
   0x5   : > { %s1126_s19 = sshll.u32 (!%p167_p2), %s1121_s16, 5  ;;  %s1447_s29 = smov (!%p167_p2), 124  }
   0x6   : > { %170 = sbr.rel (%p167_p2) target bundleno = 429 (0x1ad), region = 32  ;;  %p198_p3 = scmp.lt.s32.totalorder (!%p167_p2), %s1126_s19, 63 }
   0xb   : > { %v248_v0 = vld [vmem:[%s1929_s1] sm:$0x3]  ;;  %vm385_vm0 = vcmask 1041408   ;;  %s1934_s19 = smov (!%p198_p3, %s1126_s19), 63  ;;  %vm336_vm1 = vcmask 31744   ;;  %vm870_vm2 = vcmask 27648  }
   0xc   : > { %1284 = vmatprep.subr.msk.bf16.mxu0 %vm385_vm0, %v248_v0  ;;  %1285 = vmatprep.subr.msk.bf16.mxu1 %vm385_vm0, %v248_v0  ;;  %v387_v1 = vsel %vm385_vm0, %v248_v0, 0  ;;  %s1484_s20 = sshll.u32 %s1934_s19, 2  ;;  %v1527_v18 = vld [vmem:[%s1930_s2] ss:$0 sm:$0xff] }
   0xd   : > { %1249 = vmatpush3.bf16.msra.mxu0 %v387_v1  ;;  %1283 = vmatpush3.bf16.msra.mxu1 %v387_v1  ;;  %s1490_s23 = scalar_lea.vmem %s1928_s0, %s1484_s20  ;;  %s1682_s28 = scalar_lea.vmem %s1931_s3, %s1484_s20 }
   0xe   : > { %v1295_v2 = vld [vmem:[%s1490_s23] sm:$0xff]   ;;  %v1297_v4 = vld [vmem:[%s1490_s23 + $0x8] sm:$0xff]   ;;  %v1299_v6 = vld [vmem:[%s1490_s23 + $0x10] sm:$0xff]   ;;  %s1859_s6 = scalar_lea.vmem %s1932_s4, %s1484_s20 }
   0xf   : > { %v1296_v3 = vld [vmem:[%s1490_s23 + $0x40] sm:$0xff]   ;;  %1250 = vmatprep.mubr.msk.bf16.mxu0 %vm336_vm1, %v1295_v2  ;;  %v1298_v5 = vld [vmem:[%s1490_s23 + $0x48] sm:$0xff]   ;;  %v1300_v7 = vld [vmem:[%s1490_s23 + $0x50] sm:$0xff]  }
  0x10   : > { %1266 = vmatprep.mubr.msk.bf16.mxu1 %vm336_vm1, %v1296_v3  ;;  %1251 = vmatmul.mubr.msk.bf16.vlgmr.msra.gmra.mxu0 %vm336_vm1, %v1297_v4  ;;  %v1301_v8 = vld [vmem:[%s1490_s23 + $0x18] sm:$0xff]   ;;  %v1303_v10 = vld [vmem:[%s1490_s23 + $0x20] sm:$0xff]   ;;  %v1305_v12 = vld [vmem:[%s1490_s23 + $0x28] sm:$0xff]  }
  0x11   : > { %1267 = vmatmul.mubr.msk.bf16.vlgmr.msra.gmra.mxu1 %vm336_vm1, %v1298_v5  ;;  %1254 = vmatprep.mubr.msk.bf16.mxu0 %vm336_vm1, %v1299_v6  ;;  %v1302_v9 = vld [vmem:[%s1490_s23 + $0x58] sm:$0xff]   ;;  %v1304_v11 = vld [vmem:[%s1490_s23 + $0x60] sm:$0xff]   ;;  %v1306_v13 = vld [vmem:[%s1490_s23 + $0x68] sm:$0xff]  }
  0x12   : > { %1270 = vmatprep.mubr.msk.bf16.mxu1 %vm336_vm1, %v1300_v7  ;;  %v1307_v14 = vld [vmem:[%s1490_s23 + $0x30] sm:$0xff]   ;;  %v1309_v16 = vld [vmem:[%s1490_s23 + $0x38] sm:$0xff]  }
  0x13   : > { %v1308_v15 = vld [vmem:[%s1490_s23 + $0x70] sm:$0xff]   ;;  %v1310_v17 = vld [vmem:[%s1490_s23 + $0x78] sm:$0xff]  }
  0x18   : > { %1255 = vmatmul.mubr.msk.bf16.gmra.mxu0 %vm336_vm1, %v1301_v8 }
  0x19   : > { %1271 = vmatmul.mubr.msk.bf16.gmra.mxu1 %vm336_vm1, %v1302_v9  ;;  %1258 = vmatprep.mubr.msk.bf16.mxu0 %vm336_vm1, %v1303_v10 }
  0x1a   : > { %1274 = vmatprep.mubr.msk.bf16.mxu1 %vm336_vm1, %v1304_v11 }
  0x20   : > { %1259 = vmatmul.mubr.msk.bf16.gmra.mxu0 %vm336_vm1, %v1305_v12 }
  0x21   : > { %1275 = vmatmul.mubr.msk.bf16.gmra.mxu1 %vm336_vm1, %v1306_v13  ;;  %1262 = vmatprep.mubr.msk.bf16.mxu0 %vm336_vm1, %v1307_v14 }
  0x22   : > { %1278 = vmatprep.mubr.msk.bf16.mxu1 %vm336_vm1, %v1308_v15 }
  0x28   : > { %1263 = vmatmul.mubr.msk.bf16.gmra.mxu0 %vm336_vm1, %v1309_v16 }
  0x29   : > { %1279 = vmatmul.mubr.msk.bf16.gmra.mxu1 %vm336_vm1, %v1310_v17 }
  0xd0   : > { %v1252_v19 = vpop.f32.mrf.mxu0 }
  0xd1   : > { %v1530_v20 = vadd.f32 %v1252_v19, %v1527_v18  ;;  %v1268_v21 = vpop.f32.mrf.mxu1 }
  0xd2   : > { %v1533_v22 = vadd.f32 %v1268_v21, %v1527_v18  ;;  %v423_v23 = vpop.f32.mrf.mxu0 }
  0xd3   : > { %v552_v24 = vsub.f32 0.0, %v1530_v20  ;;  %v1537_v25 = vadd.f32 %v1527_v18, %v423_v23  ;;  %v487_v26 = vpop.f32.mrf.mxu1 }
  0xd4   : > { %v568_v27 = vsub.f32 0.0, %v1533_v22  ;;  %v1541_v28 = vadd.f32 %v1527_v18, %v487_v26  ;;  %v1253_v29 = vpop.f32.mrf.mxu0 }
  0xd5   : > { %v586_v30 = vmul.f32 1.442695, %v552_v24  ;;  %v550_v31 = vsub.f32 0.0, %v1537_v25  ;;  %v1545_v32 = vadd.f32 %v1253_v29, %v1527_v18  ;;  %v1269_v33 = vpop.f32.mrf.mxu1 }
  0xd6   : > { %v618_v34 = vmul.f32 1.442695, %v568_v27  ;;  %v566_v35 = vsub.f32 0.0, %v1541_v28  ;;  %v1549_v36 = vadd.f32 %v1269_v33, %v1527_v18  ;;  %v426_v37 = vpop.f32.mrf.mxu0 }
  0xd7   : > { %1311 = vpow2.f32 %v586_v30  ;;  %v582_v38 = vmul.f32 1.442695, %v550_v31  ;;  %v553_v39 = vsub.f32 0.0, %v1545_v32  ;;  %v1553_v40 = vadd.f32 %v1527_v18, %v426_v37  ;;  %v490_v41 = vpop.f32.mrf.mxu1 }
  0xd8   : > { %1313 = vpow2.f32 %v618_v34  ;;  %v614_v42 = vmul.f32 1.442695, %v566_v35  ;;  %v569_v43 = vsub.f32 0.0, %v1549_v36  ;;  %v1557_v44 = vadd.f32 %v1527_v18, %v490_v41  ;;  %v1256_v45 = vpop.f32.mrf.mxu0 }
  0xd9   : > { %1315 = vpow2.f32 %v582_v38  ;;  %v588_v46 = vmul.f32 1.442695, %v553_v39  ;;  %v551_v47 = vsub.f32 0.0, %v1553_v40  ;;  %v1561_v48 = vadd.f32 %v1256_v45, %v1527_v18  ;;  %v1272_v49 = vpop.f32.mrf.mxu1 }
  0xda   : > { %1317 = vpow2.f32 %v614_v42  ;;  %v620_v50 = vmul.f32 1.442695, %v569_v43  ;;  %v567_v51 = vsub.f32 0.0, %v1557_v44  ;;  %v1565_v52 = vadd.f32 %v1272_v49, %v1527_v18  ;;  %v439_v53 = vpop.f32.mrf.mxu0 }
  0xdb   : > { %1319 = vpow2.f32 %v588_v46  ;;  %v584_v54 = vmul.f32 1.442695, %v551_v47  ;;  %v556_v55 = vsub.f32 0.0, %v1561_v48  ;;  %v1569_v56 = vadd.f32 %v1527_v18, %v439_v53  ;;  %v503_v57 = vpop.f32.mrf.mxu1 }
  0xdc   : > { %1321 = vpow2.f32 %v620_v50  ;;  %v616_v58 = vmul.f32 1.442695, %v567_v51  ;;  %v572_v59 = vsub.f32 0.0, %v1565_v52  ;;  %v1573_v60 = vadd.f32 %v1527_v18, %v503_v57  ;;  %v1257_v61 = vpop.f32.mrf.mxu0 }
  0xdd   : > { %1323 = vpow2.f32 %v584_v54  ;;  %v594_v62 = vmul.f32 1.442695, %v556_v55  ;;  %v554_v63 = vsub.f32 0.0, %v1569_v56  ;;  %v1577_v0 = vadd.f32 %v1257_v61, %v1527_v18  ;;  %v1273_v1 = vpop.f32.mrf.mxu1 }
  0xde   : > { %1325 = vpow2.f32 %v616_v58  ;;  %v626_v2 = vmul.f32 1.442695, %v572_v59  ;;  %v570_v3 = vsub.f32 0.0, %v1573_v60  ;;  %v1581_v4 = vadd.f32 %v1273_v1, %v1527_v18  ;;  %v442_v5 = vpop.f32.mrf.mxu0 }
  0xdf   : > { %1327 = vpow2.f32 %v594_v62  ;;  %v590_v6 = vmul.f32 1.442695, %v554_v63  ;;  %v557_v7 = vsub.f32 0.0, %v1577_v0  ;;  %v1585_v8 = vadd.f32 %v1527_v18, %v442_v5  ;;  %v506_v9 = vpop.f32.mrf.mxu1 }
  0xe0   : > { %1329 = vpow2.f32 %v626_v2  ;;  %v622_v10 = vmul.f32 1.442695, %v570_v3  ;;  %v573_v11 = vsub.f32 0.0, %v1581_v4  ;;  %v1589_v12 = vadd.f32 %v1527_v18, %v506_v9  ;;  %v1260_v13 = vpop.f32.mrf.mxu0 }
  0xe1   : > { %1331 = vpow2.f32 %v590_v6  ;;  %v596_v14 = vmul.f32 1.442695, %v557_v7  ;;  %v555_v15 = vsub.f32 0.0, %v1585_v8  ;;  %v1593_v16 = vadd.f32 %v1260_v13, %v1527_v18  ;;  %v1276_v17 = vpop.f32.mrf.mxu1 }
  0xe2   : > { %1333 = vpow2.f32 %v622_v10  ;;  %v628_v19 = vmul.f32 1.442695, %v573_v11  ;;  %v571_v21 = vsub.f32 0.0, %v1589_v12  ;;  %v1597_v23 = vadd.f32 %v1276_v17, %v1527_v18  ;;  %v455_v24 = vpop.f32.mrf.mxu0 }
  0xe3   : > { %1335 = vpow2.f32 %v596_v14  ;;  %v592_v26 = vmul.f32 1.442695, %v555_v15  ;;  %v1600_v27 = vadd.f32 %v1527_v18, %v455_v24  ;;  %v519_v29 = vpop.f32.mrf.mxu1  ;;  %v560_v38 = vsub.f32 0.0, %v1593_v16 }
  0xe4   : > { %v1312_v30 = vpop.eup %1311  ;;  %1337 = vpow2.f32 %v628_v19  ;;  %v624_v31 = vmul.f32 1.442695, %v571_v21  ;;  %v1603_v33 = vadd.f32 %v1527_v18, %v519_v29  ;;  %v1261_v34 = vpop.f32.mrf.mxu0  ;;  %v576_v43 = vsub.f32 0.0, %v1597_v23 }
  0xe5   : > { %v1314_v35 = vpop.eup %1313  ;;  %v648_v37 = vadd.f32 1.0, %v1312_v30  ;;  %1339 = vpow2.f32 %v592_v26  ;;  %v1277_v39 = vpop.f32.mrf.mxu1  ;;  %v558_v49 = vsub.f32 0.0, %v1600_v27  ;;  %v1609_v59 = vmul.f32 1.442695, %v560_v38 }
  0xe6   : > { %v1316_v41 = vpop.eup %1315  ;;  %v664_v42 = vadd.f32 1.0, %v1314_v35  ;;  %1341 = vpow2.f32 %v624_v31  ;;  %v458_v45 = vpop.f32.mrf.mxu0  ;;  %v574_v54 = vsub.f32 0.0, %v1603_v33  ;;  %v1612_v61 = vadd.f32 %v1261_v34, %v1527_v18 }
  0xe7   : > { %v1318_v46 = vpop.eup %1317  ;;  %1343 = vrcp.f32 %v648_v37  ;;  %v646_v47 = vadd.f32 1.0, %v1316_v41  ;;  %v522_v50 = vpop.f32.mrf.mxu1  ;;  %v1614_v2 = vmul.f32 1.442695, %v576_v43  ;;  %v1617_v3 = vadd.f32 %v1277_v39, %v1527_v18 }
  0xe8   : > { %v1320_v51 = vpop.eup %1319  ;;  %1345 = vrcp.f32 %v664_v42  ;;  %v662_v53 = vadd.f32 1.0, %v1318_v46  ;;  %v1264_v55 = vpop.f32.mrf.mxu0  ;;  %v1619_v7 = vmul.f32 1.442695, %v558_v49  ;;  %v1622_v9 = vadd.f32 %v1527_v18, %v458_v45 }
  0xe9   : > { %v1322_v57 = vpop.eup %1321  ;;  %1347 = vrcp.f32 %v646_v47  ;;  %v649_v58 = vadd.f32 1.0, %v1320_v51  ;;  %v1280_v62 = vpop.f32.mrf.mxu1  ;;  %v1624_v13 = vmul.f32 1.442695, %v574_v54  ;;  %v1627_v14 = vadd.f32 %v1527_v18, %v522_v50 }
  0xea   : > { %v1324_v63 = vpop.eup %1323  ;;  %1349 = vrcp.f32 %v662_v53  ;;  %v665_v1 = vadd.f32 1.0, %v1322_v57  ;;  %v471_v15 = vpop.f32.mrf.mxu0  ;;  %v561_v21 = vsub.f32 0.0, %v1612_v61  ;;  %v1631_v24 = vadd.f32 %v1264_v55, %v1527_v18 }
  0xeb   : > { %v1326_v5 = vpop.eup %1325  ;;  %1351 = vrcp.f32 %v649_v58  ;;  %v647_v6 = vadd.f32 1.0, %v1324_v63  ;;  %v535_v26 = vpop.f32.mrf.mxu1  ;;  %v577_v31 = vsub.f32 0.0, %v1617_v3  ;;  %v1635_v34 = vadd.f32 %v1280_v62, %v1527_v18 }
  0xec   : > { %v1328_v10 = vpop.eup %1327  ;;  %1353 = vrcp.f32 %v665_v1  ;;  %v663_v11 = vadd.f32 1.0, %v1326_v5  ;;  %v559_v38 = vsub.f32 0.0, %v1622_v9  ;;  %v1639_v39 = vadd.f32 %v1527_v18, %v471_v15  ;;  %v1265_v46 = vpop.f32.mrf.mxu0 }
  0xed   : > { %v1330_v17 = vpop.eup %1329  ;;  %1355 = vrcp.f32 %v647_v6  ;;  %v652_v19 = vadd.f32 1.0, %v1328_v10  ;;  %v575_v43 = vsub.f32 0.0, %v1627_v14  ;;  %v1643_v45 = vadd.f32 %v1527_v18, %v535_v26  ;;  %v1281_v58 = vpop.f32.mrf.mxu1 }
  0xee   : > { %v1332_v29 = vpop.eup %1331  ;;  %1357 = vrcp.f32 %v663_v11  ;;  %v668_v30 = vadd.f32 1.0, %v1330_v17  ;;  %v564_v50 = vsub.f32 0.0, %v1631_v24  ;;  %v580_v51 = vsub.f32 0.0, %v1635_v34 }
  0xef   : > { %v1334_v35 = vpop.eup %1333  ;;  %1359 = vrcp.f32 %v652_v19  ;;  %v650_v37 = vadd.f32 1.0, %v1332_v29  ;;  %v562_v55 = vsub.f32 0.0, %v1639_v39  ;;  %v578_v57 = vsub.f32 0.0, %v1643_v45 }
  0xf0   : > { %v1336_v41 = vpop.eup %1335  ;;  %1361 = vrcp.f32 %v668_v30  ;;  %v666_v42 = vadd.f32 1.0, %v1334_v35  ;;  %v604_v1 = vmul.f32 1.442695, %v561_v21  ;;  %v1650_v5 = vadd.f32 %v1265_v46, %v1527_v18  ;;  %v474_v30 = vpop.f32.mrf.mxu0 }
  0xf1   : > { %v1338_v47 = vpop.eup %1337  ;;  %1363 = vrcp.f32 %v650_v37  ;;  %v653_v49 = vadd.f32 1.0, %v1336_v41  ;;  %v636_v11 = vmul.f32 1.442695, %v577_v31  ;;  %v600_v15 = vmul.f32 1.442695, %v559_v38 }
  0xf2   : > { %v1340_v53 = vpop.eup %1339  ;;  %1365 = vrcp.f32 %v666_v42  ;;  %v669_v54 = vadd.f32 1.0, %v1338_v47  ;;  %v632_v19 = vmul.f32 1.442695, %v575_v43  ;;  %v1652_v26 = vmul.f32 1.442695, %v564_v50  ;;  %v538_v42 = vpop.f32.mrf.mxu1 }
  0xf3   : > { %v1342_v62 = vpop.eup %1341  ;;  %1367 = vrcp.f32 %v653_v49  ;;  %v651_v63 = vadd.f32 1.0, %v1340_v53  ;;  %v1654_v29 = vmul.f32 1.442695, %v580_v51  ;;  %v1656_v37 = vmul.f32 1.442695, %v562_v55 }
  0xf4   : > { %v1344_v6 = vpop.eup %1343  ;;  %1369 = vrcp.f32 %v669_v54  ;;  %v667_v10 = vadd.f32 1.0, %v1342_v62  ;;  %v1658_v21 = vmul.f32 1.442695, %v578_v57  ;;  %v1661_v41 = vadd.f32 %v1281_v58, %v1527_v18 }
  0xf5   : > { %v1346_v17 = vpop.eup %1345  ;;  %1371 = vrcp.f32 %v651_v63  ;;  %v565_v43 = vsub.f32 0.0, %v1650_v5  ;;  %v1670_v50 = vadd.f32 %v1527_v18, %v474_v30  ;;  %v712_v51 = vmul.f32 %v1344_v6, %v1530_v20 }
  0xf6   : > { %v1348_v35 = vpop.eup %1347  ;;  %1373 = vrcp.f32 %v667_v10  ;;  %v728_v46 = vmul.f32 %v1346_v17, %v1533_v22 }
  0xf7   : > { %v1350_v31 = vpop.eup %1349  ;;  %v710_v38 = vmul.f32 %v1348_v35, %v1537_v25  ;;  %1375 = vpow2.f32 %v1609_v59  ;;  %v1676_v59 = vadd.f32 %v1527_v18, %v538_v42  ;;  %v1201_v58 = vpack.c.bf16 %v712_v51, %v712_v51 }
  0xf8   : > { %v1352_v47 = vpop.eup %1351  ;;  %v726_v49 = vmul.f32 %v1350_v31, %v1541_v28  ;;  %1377 = vpow2.f32 %v1614_v2  ;;  %v1217_v55 = vpack.c.bf16 %v728_v46, %v728_v46 }
  0xf9   : > { %v1354_v53 = vpop.eup %1353  ;;  %v1199_v54 = vpack.c.bf16 %v710_v38, %v710_v38  ;;  %v713_v25 = vmul.f32 %v1352_v47, %v1545_v32  ;;  %1379 = vpow2.f32 %v1619_v7  ;;  %v581_v32 = vsub.f32 0.0, %v1661_v41  ;;  %907 = vrot.lane.b32.xlu1 %v1201_v58, %s1447_s29  ;;  %873 = vst.msk [vmem:[%s1682_s28 + $0x8] sm:$0xf] %vm870_vm2, %v1201_v58 }
  0xfa   : > { %v1356_v22 = vpop.eup %1355  ;;  %v1684_v28 = vpack.c.bf16 %v726_v49, %v726_v49  ;;  %v729_v20 = vmul.f32 %v1354_v53, %v1549_v36  ;;  %1381 = vpow2.f32 %v1624_v13  ;;  %939 = vrot.lane.b32.xlu0 %v1217_v55, %s1447_s29  ;;  %889 = vst.msk [vmem:[%s1682_s28 + $0x48] sm:$0xf] %vm870_vm2, %v1217_v55 }
  0xfb   : > { %v1358_v2 = vpop.eup %1357  ;;  %871 = vst.msk [vmem:[%s1682_s28] sm:$0xf] %vm870_vm2, %v1199_v54  ;;  %v1202_v18 = vpack.c.bf16 %v713_v25, %v713_v25  ;;  %v711_v7 = vmul.f32 %v1356_v22, %v1553_v40  ;;  %1383 = vpow2.f32 %v604_v1  ;;  %v563_v1 = vsub.f32 0.0, %v1670_v50 }
  0xfc   : > { %v1360_v57 = vpop.eup %1359  ;;  %887 = vst.msk [vmem:[%s1682_s28 + $0x40] sm:$0xf] %vm870_vm2, %v1684_v28  ;;  %v1695_v36 = vpack.c.bf16 %v729_v20, %v729_v20  ;;  %v727_v13 = vmul.f32 %v1358_v2, %v1557_v44  ;;  %1385 = vpow2.f32 %v636_v11  ;;  %v644_v42 = vmul.f32 1.442695, %v581_v32 }
  0xfd   : > { %v1362_v62 = vpop.eup %1361  ;;  %874 = vst.msk [vmem:[%s1682_s28 + $0xc] sm:$0xf] %vm870_vm2, %v1202_v18  ;;  %v1700_v63 = vpack.c.bf16 %v711_v7, %v711_v7  ;;  %v716_v40 = vmul.f32 %v1360_v57, %v1561_v48  ;;  %1387 = vpow2.f32 %v600_v15  ;;  %v579_v48 = vsub.f32 0.0, %v1676_v59  ;;  %909 = vrot.lane.b32.xlu1 %v1202_v18, %s1447_s29 }
  0xfe   : > { %v1364_v44 = vpop.eup %1363  ;;  %890 = vst.msk [vmem:[%s1682_s28 + $0x4c] sm:$0xf] %vm870_vm2, %v1695_v36  ;;  %v1710_v6 = vpack.c.bf16 %v727_v13, %v727_v13  ;;  %v732_v10 = vmul.f32 %v1362_v62, %v1565_v52  ;;  %1389 = vpow2.f32 %v632_v19  ;;  %v612_v52 = vmul.f32 1.442695, %v565_v43  ;;  %903 = vrot.lane.b32.xlu0 %v1199_v54, %s1447_s29 }
  0xff   : > { %v1366_v11 = vpop.eup %1365  ;;  %872 = vst.msk [vmem:[%s1682_s28 + $0x4] sm:$0xf] %vm870_vm2, %v1700_v63  ;;  %v1720_v15 = vpack.c.bf16 %v716_v40, %v716_v40  ;;  %v714_v17 = vmul.f32 %v1364_v44, %v1569_v56  ;;  %1391 = vpow2.f32 %v1652_v26  ;;  %v608_v38 = vmul.f32 1.442695, %v563_v1 }
 0x100   : > { %v1368_v19 = vpop.eup %1367  ;;  %888 = vst.msk [vmem:[%s1682_s28 + $0x44] sm:$0xf] %vm870_vm2, %v1710_v6  ;;  %v1727_v30 = vpack.c.bf16 %v732_v10, %v732_v10  ;;  %v730_v35 = vmul.f32 %v1366_v11, %v1573_v60  ;;  %1393 = vpow2.f32 %v1654_v29  ;;  %v640_v46 = vmul.f32 1.442695, %v579_v48 }
 0x101   : > { %v1370_v31 = vpop.eup %1369  ;;  %877 = vst.msk [vmem:[%s1682_s28 + $0x18] sm:$0xf] %vm870_vm2, %v1720_v15  ;;  %v1734_v56 = vpack.c.bf16 %v714_v17, %v714_v17  ;;  %v717_v26 = vmul.f32 %v1368_v19, %v1577_v0  ;;  %1395 = vpow2.f32 %v1656_v37  ;;  %941 = vrot.lane.b32.xlu1 %v1695_v36, %s1447_s29 }
 0x102   : > { %v1372_v43 = vpop.eup %1371  ;;  %893 = vst.msk [vmem:[%s1682_s28 + $0x58] sm:$0xf] %vm870_vm2, %v1727_v30  ;;  %v1742_v60 = vpack.c.bf16 %v730_v35, %v730_v35  ;;  %v733_v29 = vmul.f32 %v1370_v31, %v1581_v4  ;;  %1397 = vpow2.f32 %v1658_v21  ;;  %935 = vrot.lane.b32.xlu0 %v1684_v28, %s1447_s29 }
 0x103   : > { %v1374_v0 = vpop.eup %1373  ;;  %875 = vst.msk [vmem:[%s1682_s28 + $0x10] sm:$0xf] %vm870_vm2, %v1734_v56  ;;  %v1206_v37 = vpack.c.bf16 %v717_v26, %v717_v26  ;;  %v715_v47 = vmul.f32 %v1372_v43, %v1585_v8  ;;  %1399 = vpow2.f32 %v612_v52 }
 0x104   : > { %v1376_v49 = vpop.eup %1375  ;;  %891 = vst.msk [vmem:[%s1682_s28 + $0x50] sm:$0xf] %vm870_vm2, %v1742_v60  ;;  %v1222_v51 = vpack.c.bf16 %v733_v29, %v733_v29  ;;  %v731_v4 = vmul.f32 %v1374_v0, %v1589_v12  ;;  %1401 = vpow2.f32 %v644_v42 }
 0x105   : > { %v1378_v21 = vpop.eup %1377  ;;  %878 = vst.msk [vmem:[%s1682_s28 + $0x1c] sm:$0xf] %vm870_vm2, %v1206_v37  ;;  %v1757_v53 = vpack.c.bf16 %v715_v47, %v715_v47  ;;  %v656_v54 = vadd.f32 1.0, %v1376_v49  ;;  %1403 = vpow2.f32 %v608_v38  ;;  %937 = vrot.lane.b32.xlu1 %v1710_v6, %s1447_s29 }
 0x106   : > { %v1380_v8 = vpop.eup %1379  ;;  %894 = vst.msk [vmem:[%s1682_s28 + $0x5c] sm:$0xf] %vm870_vm2, %v1222_v51  ;;  %v1763_v25 = vpack.c.bf16 %v731_v4, %v731_v4  ;;  %v672_v22 = vadd.f32 1.0, %v1378_v21  ;;  %1405 = vpow2.f32 %v640_v46  ;;  %905 = vrot.lane.b32.xlu0 %v1700_v63, %s1447_s29 }
 0x107   : > { %v1382_v12 = vpop.eup %1381  ;;  %876 = vst.msk [vmem:[%s1682_s28 + $0x14] sm:$0xf] %vm870_vm2, %v1757_v53  ;;  %1407 = vrcp.f32 %v656_v54  ;;  %v654_v20 = vadd.f32 1.0, %v1380_v8 }
 0x108   : > { %v1384_v32 = vpop.eup %1383  ;;  %892 = vst.msk [vmem:[%s1682_s28 + $0x54] sm:$0xf] %vm870_vm2, %v1763_v25  ;;  %1409 = vrcp.f32 %v672_v22  ;;  %v670_v28 = vadd.f32 1.0, %v1382_v12 }
 0x109   : > { %v1386_v2 = vpop.eup %1385  ;;  %1411 = vrcp.f32 %v654_v20  ;;  %v657_v18 = vadd.f32 1.0, %v1384_v32  ;;  %917 = vrot.lane.b32.xlu1 %v1206_v37, %s1447_s29 }
 0x10a   : > { %v1388_v7 = vpop.eup %1387  ;;  %1413 = vrcp.f32 %v670_v28  ;;  %v673_v55 = vadd.f32 1.0, %v1386_v2  ;;  %915 = vrot.lane.b32.xlu0 %v1720_v15, %s1447_s29 }
 0x10b   : > { %v1390_v57 = vpop.eup %1389  ;;  %1415 = vrcp.f32 %v657_v18  ;;  %v655_v36 = vadd.f32 1.0, %v1388_v7 }
 0x10c   : > { %v1392_v13 = vpop.eup %1391  ;;  %1417 = vrcp.f32 %v673_v55  ;;  %v671_v58 = vadd.f32 1.0, %v1390_v57 }
 0x10d   : > { %v1394_v62 = vpop.eup %1393  ;;  %1419 = vrcp.f32 %v655_v36  ;;  %v660_v40 = vadd.f32 1.0, %v1392_v13  ;;  %949 = vrot.lane.b32.xlu1 %v1222_v51, %s1447_s29 }
 0x10e   : > { %v1396_v1 = vpop.eup %1395  ;;  %1421 = vrcp.f32 %v671_v58  ;;  %v676_v63 = vadd.f32 1.0, %v1394_v62  ;;  %947 = vrot.lane.b32.xlu0 %v1727_v30, %s1447_s29 }
 0x10f   : > { %v1398_v44 = vpop.eup %1397  ;;  %1423 = vrcp.f32 %v660_v40  ;;  %v658_v6 = vadd.f32 1.0, %v1396_v1 }
 0x110   : > { %v1400_v10 = vpop.eup %1399  ;;  %1425 = vrcp.f32 %v676_v63  ;;  %v674_v48 = vadd.f32 1.0, %v1398_v44 }
 0x111   : > { %v1402_v11 = vpop.eup %1401  ;;  %1427 = vrcp.f32 %v658_v6  ;;  %v661_v17 = vadd.f32 1.0, %v1400_v10  ;;  %913 = vrot.lane.b32.xlu1 %v1757_v53, %s1447_s29 }
 0x112   : > { %v1404_v52 = vpop.eup %1403  ;;  %1429 = vrcp.f32 %v674_v48  ;;  %v677_v15 = vadd.f32 1.0, %v1402_v11  ;;  %911 = vrot.lane.b32.xlu0 %v1734_v56, %s1447_s29 }
 0x113   : > { %v1406_v19 = vpop.eup %1405  ;;  %1431 = vrcp.f32 %v661_v17  ;;  %v659_v35 = vadd.f32 1.0, %v1404_v52 }
 0x114   : > { %v1408_v42 = vpop.eup %1407  ;;  %1433 = vrcp.f32 %v677_v15  ;;  %v675_v31 = vadd.f32 1.0, %v1406_v19 }
 0x115   : > { %v1410_v26 = vpop.eup %1409  ;;  %v720_v38 = vmul.f32 %v1408_v42, %v1593_v16  ;;  %1435 = vrcp.f32 %v659_v35  ;;  %945 = vrot.lane.b32.xlu1 %v1763_v25, %s1447_s29 }
 0x116   : > { %v1412_v30 = vpop.eup %1411  ;;  %v736_v43 = vmul.f32 %v1410_v26, %v1597_v23  ;;  %1437 = vrcp.f32 %v675_v31  ;;  %943 = vrot.lane.b32.xlu0 %v1742_v60, %s1447_s29 }
 0x117   : > { %v1414_v29 = vpop.eup %1413  ;;  %v1209_v46 = vpack.c.bf16 %v720_v38, %v720_v38  ;;  %v718_v0 = vmul.f32 %v1412_v30, %v1600_v27 }
 0x118   : > { %v1416_v37 = vpop.eup %1415  ;;  %v1225_v47 = vpack.c.bf16 %v736_v43, %v736_v43  ;;  %v734_v16 = vmul.f32 %v1414_v29, %v1603_v33 }
 0x119   : > { %v1418_v49 = vpop.eup %1417  ;;  %881 = vst.msk [vmem:[%s1682_s28 + $0x28] sm:$0xf] %vm870_vm2, %v1209_v46  ;;  %v1207_v56 = vpack.c.bf16 %v718_v0, %v718_v0  ;;  %v721_v23 = vmul.f32 %v1416_v37, %v1612_v61 }
 0x11a   : > { %v1420_v51 = vpop.eup %1419  ;;  %897 = vst.msk [vmem:[%s1682_s28 + $0x68] sm:$0xf] %vm870_vm2, %v1225_v47  ;;  %v1223_v4 = vpack.c.bf16 %v734_v16, %v734_v16  ;;  %v737_v27 = vmul.f32 %v1418_v49, %v1617_v3  ;;  %923 = vrot.lane.b32.xlu0 %v1209_v46, %s1447_s29 }
 0x11b   : > { %v1422_v33 = vpop.eup %1421  ;;  %879 = vst.msk [vmem:[%s1682_s28 + $0x20] sm:$0xf] %vm870_vm2, %v1207_v56  ;;  %v1210_v21 = vpack.c.bf16 %v721_v23, %v721_v23  ;;  %v719_v61 = vmul.f32 %v1420_v51, %v1622_v9 }
 0x11c   : > { %v1424_v53 = vpop.eup %1423  ;;  %895 = vst.msk [vmem:[%s1682_s28 + $0x60] sm:$0xf] %vm870_vm2, %v1223_v4  ;;  %v1226_v60 = vpack.c.bf16 %v737_v27, %v737_v27  ;;  %v735_v54 = vmul.f32 %v1422_v33, %v1627_v14 }
 0x11d   : > { %v1426_v8 = vpop.eup %1425  ;;  %882 = vst.msk [vmem:[%s1682_s28 + $0x2c] sm:$0xf] %vm870_vm2, %v1210_v21  ;;  %v1208_v3 = vpack.c.bf16 %v719_v61, %v719_v61  ;;  %v724_v25 = vmul.f32 %v1424_v53, %v1631_v24  ;;  %925 = vrot.lane.b32.xlu1 %v1210_v21, %s1447_s29 }
 0x11e   : > { %v1428_v22 = vpop.eup %1427  ;;  %898 = vst.msk [vmem:[%s1682_s28 + $0x6c] sm:$0xf] %vm870_vm2, %v1226_v60  ;;  %v1224_v9 = vpack.c.bf16 %v735_v54, %v735_v54  ;;  %v740_v12 = vmul.f32 %v1426_v8, %v1635_v34  ;;  %955 = vrot.lane.b32.xlu0 %v1225_v47, %s1447_s29 }
 0x11f   : > { %v1430_v14 = vpop.eup %1429  ;;  %880 = vst.msk [vmem:[%s1682_s28 + $0x24] sm:$0xf] %vm870_vm2, %v1208_v3  ;;  %v1213_v20 = vpack.c.bf16 %v724_v25, %v724_v25  ;;  %v722_v32 = vmul.f32 %v1428_v22, %v1639_v39 }
 0x120   : > { %v1432_v24 = vpop.eup %1431  ;;  %896 = vst.msk [vmem:[%s1682_s28 + $0x64] sm:$0xf] %vm870_vm2, %v1224_v9  ;;  %v1229_v28 = vpack.c.bf16 %v740_v12, %v740_v12  ;;  %v738_v2 = vmul.f32 %v1430_v14, %v1643_v45 }
 0x121   : > { %v1434_v18 = vpop.eup %1433  ;;  %885 = vst.msk [vmem:[%s1682_s28 + $0x38] sm:$0xf] %vm870_vm2, %v1213_v20  ;;  %v1211_v34 = vpack.c.bf16 %v722_v32, %v722_v32  ;;  %v725_v7 = vmul.f32 %v1432_v24, %v1650_v5  ;;  %957 = vrot.lane.b32.xlu1 %v1226_v60, %s1447_s29 }
 0x122   : > { %v1436_v55 = vpop.eup %1435  ;;  %901 = vst.msk [vmem:[%s1682_s28 + $0x78] sm:$0xf] %vm870_vm2, %v1229_v28  ;;  %v1227_v39 = vpack.c.bf16 %v738_v2, %v738_v2  ;;  %v741_v57 = vmul.f32 %v1434_v18, %v1661_v41  ;;  %919 = vrot.lane.b32.xlu0 %v1207_v56, %s1447_s29 }
 0x123   : > { %v1438_v45 = vpop.eup %1437  ;;  %883 = vst.msk [vmem:[%s1682_s28 + $0x30] sm:$0xf] %vm870_vm2, %v1211_v34  ;;  %v1214_v36 = vpack.c.bf16 %v725_v7, %v725_v7  ;;  %v723_v13 = vmul.f32 %v1436_v55, %v1670_v50 }
 0x124   : > { %899 = vst.msk [vmem:[%s1682_s28 + $0x70] sm:$0xf] %vm870_vm2, %v1227_v39  ;;  %v1230_v5 = vpack.c.bf16 %v741_v57, %v741_v57  ;;  %v739_v58 = vmul.f32 %v1438_v45, %v1676_v59 }
 0x125   : > { %886 = vst.msk [vmem:[%s1682_s28 + $0x3c] sm:$0xf] %vm870_vm2, %v1214_v36  ;;  %v1212_v62 = vpack.c.bf16 %v723_v13, %v723_v13  ;;  %921 = vrot.lane.b32.xlu1 %v1208_v3, %s1447_s29 }
 0x126   : > { %902 = vst.msk [vmem:[%s1682_s28 + $0x7c] sm:$0xf] %vm870_vm2, %v1230_v5  ;;  %v1228_v41 = vpack.c.bf16 %v739_v58, %v739_v58  ;;  %951 = vrot.lane.b32.xlu0 %v1223_v4, %s1447_s29 }
 0x127   : > { %884 = vst.msk [vmem:[%s1682_s28 + $0x34] sm:$0xf] %vm870_vm2, %v1212_v62 }
 0x128   : > { %900 = vst.msk [vmem:[%s1682_s28 + $0x74] sm:$0xf] %vm870_vm2, %v1228_v41 }
 0x129   : > { %953 = vrot.lane.b32.xlu1 %v1224_v9, %s1447_s29 }
 0x12a   : > { %931 = vrot.lane.b32.xlu0 %v1213_v20, %s1447_s29 }
 0x12d   : > { %933 = vrot.lane.b32.xlu1 %v1214_v36, %s1447_s29 }
 0x12e   : > { %927 = vrot.lane.b32.xlu0 %v1211_v34, %s1447_s29 }
 0x131   : > { %929 = vrot.lane.b32.xlu1 %v1212_v62, %s1447_s29 }
 0x132   : > { %959 = vrot.lane.b32.xlu0 %v1227_v39, %s1447_s29 }
 0x135   : > { %961 = vrot.lane.b32.xlu1 %v1228_v41, %s1447_s29 }
 0x136   : > { %963 = vrot.lane.b32.xlu0 %v1229_v28, %s1447_s29 }
 0x139   : > { %965 = vrot.lane.b32.xlu1 %v1230_v5, %s1447_s29 }
 0x16b   : > { %v908_v59 = vpop.permute.xlu1 %907 }
 0x16c   : > { %v940_v50 = vpop.permute.xlu0 %939  ;;  %1001 = vst.msk [vmem:[%s1859_s6 + $0x8] sm:$0xf] %vm870_vm2, %v908_v59 }
 0x16d   : > { %1017 = vst.msk [vmem:[%s1859_s6 + $0x48] sm:$0xf] %vm870_vm2, %v940_v50 }
 0x16f   : > { %v910_v1 = vpop.permute.xlu1 %909 }
 0x170   : > { %v904_v40 = vpop.permute.xlu0 %903  ;;  %1002 = vst.msk [vmem:[%s1859_s6 + $0xc] sm:$0xf] %vm870_vm2, %v910_v1 }
 0x171   : > { %999 = vst.msk [vmem:[%s1859_s6] sm:$0xf] %vm870_vm2, %v904_v40 }
 0x173   : > { %v942_v44 = vpop.permute.xlu1 %941 }
 0x174   : > { %v936_v63 = vpop.permute.xlu0 %935  ;;  %1018 = vst.msk [vmem:[%s1859_s6 + $0x4c] sm:$0xf] %vm870_vm2, %v942_v44 }
 0x175   : > { %1015 = vst.msk [vmem:[%s1859_s6 + $0x40] sm:$0xf] %vm870_vm2, %v936_v63 }
 0x177   : > { %v938_v10 = vpop.permute.xlu1 %937 }
 0x178   : > { %v906_v6 = vpop.permute.xlu0 %905  ;;  %1016 = vst.msk [vmem:[%s1859_s6 + $0x44] sm:$0xf] %vm870_vm2, %v938_v10 }
 0x179   : > { %1000 = vst.msk [vmem:[%s1859_s6 + $0x4] sm:$0xf] %vm870_vm2, %v906_v6 }
 0x17b   : > { %v918_v11 = vpop.permute.xlu1 %917 }
 0x17c   : > { %v916_v48 = vpop.permute.xlu0 %915  ;;  %1006 = vst.msk [vmem:[%s1859_s6 + $0x1c] sm:$0xf] %vm870_vm2, %v918_v11 }
 0x17d   : > { %1005 = vst.msk [vmem:[%s1859_s6 + $0x18] sm:$0xf] %vm870_vm2, %v916_v48 }
 0x17f   : > { %v950_v52 = vpop.permute.xlu1 %949 }
 0x180   : > { %v948_v17 = vpop.permute.xlu0 %947  ;;  %1022 = vst.msk [vmem:[%s1859_s6 + $0x5c] sm:$0xf] %vm870_vm2, %v950_v52 }
 0x181   : > { %1021 = vst.msk [vmem:[%s1859_s6 + $0x58] sm:$0xf] %vm870_vm2, %v948_v17 }
 0x183   : > { %v914_v19 = vpop.permute.xlu1 %913 }
 0x184   : > { %v912_v15 = vpop.permute.xlu0 %911  ;;  %1004 = vst.msk [vmem:[%s1859_s6 + $0x14] sm:$0xf] %vm870_vm2, %v914_v19 }
 0x185   : > { %1003 = vst.msk [vmem:[%s1859_s6 + $0x10] sm:$0xf] %vm870_vm2, %v912_v15 }
 0x187   : > { %v946_v42 = vpop.permute.xlu1 %945 }
 0x188   : > { %v944_v35 = vpop.permute.xlu0 %943  ;;  %1020 = vst.msk [vmem:[%s1859_s6 + $0x54] sm:$0xf] %vm870_vm2, %v946_v42 }
 0x189   : > { %1019 = vst.msk [vmem:[%s1859_s6 + $0x50] sm:$0xf] %vm870_vm2, %v944_v35 }
 0x18c   : > { %v924_v31 = vpop.permute.xlu0 %923 }
 0x18d   : > { %1009 = vst.msk [vmem:[%s1859_s6 + $0x28] sm:$0xf] %vm870_vm2, %v924_v31 }
 0x18f   : > { %v926_v26 = vpop.permute.xlu1 %925 }
 0x190   : > { %1010 = vst.msk [vmem:[%s1859_s6 + $0x2c] sm:$0xf] %vm870_vm2, %v926_v26  ;;  %v956_v38 = vpop.permute.xlu0 %955 }
 0x191   : > { %1025 = vst.msk [vmem:[%s1859_s6 + $0x68] sm:$0xf] %vm870_vm2, %v956_v38 }
 0x193   : > { %v958_v30 = vpop.permute.xlu1 %957 }
 0x194   : > { %1026 = vst.msk [vmem:[%s1859_s6 + $0x6c] sm:$0xf] %vm870_vm2, %v958_v30  ;;  %v920_v43 = vpop.permute.xlu0 %919 }
 0x195   : > { %1007 = vst.msk [vmem:[%s1859_s6 + $0x20] sm:$0xf] %vm870_vm2, %v920_v43 }
 0x197   : > { %v922_v29 = vpop.permute.xlu1 %921 }
 0x198   : > { %1008 = vst.msk [vmem:[%s1859_s6 + $0x24] sm:$0xf] %vm870_vm2, %v922_v29  ;;  %v952_v46 = vpop.permute.xlu0 %951 }
 0x199   : > { %1023 = vst.msk [vmem:[%s1859_s6 + $0x60] sm:$0xf] %vm870_vm2, %v952_v46 }
 0x19b   : > { %v954_v0 = vpop.permute.xlu1 %953 }
 0x19c   : > { %1024 = vst.msk [vmem:[%s1859_s6 + $0x64] sm:$0xf] %vm870_vm2, %v954_v0  ;;  %v932_v37 = vpop.permute.xlu0 %931 }
 0x19d   : > { %1013 = vst.msk [vmem:[%s1859_s6 + $0x38] sm:$0xf] %vm870_vm2, %v932_v37 }
 0x19f   : > { %v934_v47 = vpop.permute.xlu1 %933 }
 0x1a0   : > { %1014 = vst.msk [vmem:[%s1859_s6 + $0x3c] sm:$0xf] %vm870_vm2, %v934_v47  ;;  %v928_v16 = vpop.permute.xlu0 %927 }
 0x1a1   : > { %1011 = vst.msk [vmem:[%s1859_s6 + $0x30] sm:$0xf] %vm870_vm2, %v928_v16 }
 0x1a3   : > { %v930_v49 = vpop.permute.xlu1 %929 }
 0x1a4   : > { %1012 = vst.msk [vmem:[%s1859_s6 + $0x34] sm:$0xf] %vm870_vm2, %v930_v49  ;;  %v960_v56 = vpop.permute.xlu0 %959 }
 0x1a5   : > { %1027 = vst.msk [vmem:[%s1859_s6 + $0x70] sm:$0xf] %vm870_vm2, %v960_v56 }
 0x1a7   : > { %v962_v23 = vpop.permute.xlu1 %961 }
 0x1a8   : > { %1028 = vst.msk [vmem:[%s1859_s6 + $0x74] sm:$0xf] %vm870_vm2, %v962_v23  ;;  %v964_v51 = vpop.permute.xlu0 %963 }
 0x1a9   : > { %1029 = vst.msk [vmem:[%s1859_s6 + $0x78] sm:$0xf] %vm870_vm2, %v964_v51 }
 0x1ab   : > { %v966_v4 = vpop.permute.xlu1 %965 }
 0x1ac   : > { %1030 = vst.msk [vmem:[%s1859_s6 + $0x7c] sm:$0xf] %vm870_vm2, %v966_v4 }
 0x1ad PF: > { %s15_s15 = sadd.s32 1, %s1445_s15  }
 0x1ae   : > { %p12_p4 = scmp.ge.s32.totalorder %s15_s15, 4  }
 0x1b0   :  { %14 = sbr.rel (!%p12_p4) target bundleno = 1 (0x1), region = 74 }

</bundles_post_ra>
